<compile_context>
chip_gen: v6e
topology: v6e:2x2x1
jax: 0.10.0
libtpu: 0.0.40
codegen_flags: <defaults>
</compile_context>

<pallas_src>
import functools

import jax
import jax.numpy as jnp
from jax.experimental import pallas as pl
from jax.experimental.pallas import tpu as pltpu

EPS = 1e-5
LANE = 128
SUBLANE = 8


def _round_up(x, m):
    return (x + m - 1) // m * m


# ----------------------------------------------------------------------------- kernel
def _mlp_kernel(x_ref, w1, b1, w2, b2, w3, b3, wo, bo, out_ref, *, compute_dtype):
    """One batch tile through the full (BN-folded) MLP."""

    def act(h):
        # ReLU, then cast to the matmul operand dtype (bf16 on v6e/v7x, f32 on v5e).
        return jnp.maximum(h, 0.0).astype(compute_dtype)

    h = act(jnp.dot(x_ref[...], w1[...], preferred_element_type=jnp.float32) + b1[...])
    h = act(jnp.dot(h, w2[...], preferred_element_type=jnp.float32) + b2[...])
    h = act(jnp.dot(h, w3[...], preferred_element_type=jnp.float32) + b3[...])
    out_ref[...] = (
        jnp.dot(h, wo[...], preferred_element_type=jnp.float32) + bo[...]
    ).astype(out_ref.dtype)


# ----------------------------------------------------------------- parameter preparation
def fold_and_pad_params(params, num_feature, num_targets, *, compute_dtype=jnp.float32):
    """Fold eval-mode BatchNorm into the preceding Linear and pad narrow dims to lane
    width.  One-time O(F*512) work on constants (not per call)."""

    def fold(w, b, g, be, m, v):
        s = g * jax.lax.rsqrt(v + EPS)          # (1, dout)
        return w * s, (b - m) * s + be

    w1, b1 = fold(params["w1"], params["b1"], params["g1"], params["be1"],
                  params["m1"], params["v1"])
    w2, b2 = fold(params["w2"], params["b2"], params["g2"], params["be2"],
                  params["m2"], params["v2"])
    w3, b3 = fold(params["w3"], params["b3"], params["g3"], params["be3"],
                  params["m3"], params["v3"])
    wo, bo = params["wo"], params["bo"]

    f_pad = _round_up(num_feature, LANE)
    t_pad = _round_up(num_targets, LANE)
    w1 = jnp.pad(w1, ((0, f_pad - num_feature), (0, 0)))      # zero rows -> no effect
    wo = jnp.pad(wo, ((0, 0), (0, t_pad - num_targets)))      # zero cols -> sliced off
    bo = jnp.pad(bo, ((0, 0), (0, t_pad - num_targets)))

    cast = lambda w: w.astype(compute_dtype)   # weights cast once here; biases stay f32
    return dict(w1=cast(w1), b1=b1, w2=cast(w2), b2=b2,
                w3=cast(w3), b3=b3, wo=cast(wo), bo=bo)


# ------------------------------------------------------------------------------ wrapper
@functools.partial(jax.jit, static_argnames=("num_targets", "compute_dtype", "batch_tile"))
def reg_neural_net_forward(x, fp, *, num_targets, compute_dtype=jnp.float32,
                           batch_tile=512):
    """Full MLP forward in one Pallas kernel, gridded over the batch dimension."""
    batch, num_feature = x.shape
    f_pad = fp["w1"].shape[0]
    h1, h2, h3 = fp["w1"].shape[1], fp["w2"].shape[1], fp["w3"].shape[1]
    t_pad = fp["wo"].shape[1]

    # Batch tile: multiple of 8 (sublane), capped by the padded batch size.
    # 512-2048 is safe on every generation (v7x: 64 MiB VMEM) and feeds the MXU well.
    tb = min(_round_up(batch_tile, SUBLANE), _round_up(batch, SUBLANE))
    b_pad = _round_up(batch, tb)

    # Pad + cast activations once in the wrapper (lane-dense features, whole batch tiles).
    x_p = jnp.pad(x, ((0, b_pad - batch), (0, f_pad - num_feature))).astype(compute_dtype)

    grid = (b_pad // tb,)
    x_spec = pl.BlockSpec((tb, f_pad), lambda i: (i, 0))
    out_spec = pl.BlockSpec((tb, t_pad), lambda i: (i, 0))

    def resident(arr):
        # Constant index_map -> same block every step -> stays VMEM-resident (no re-DMA).
        return pl.BlockSpec(arr.shape, lambda i: (0, 0))

    weights = [fp["w1"], fp["b1"], fp["w2"], fp["b2"],
               fp["w3"], fp["b3"], fp["wo"], fp["bo"]]
    in_specs = [x_spec] + [resident(w) for w in weights]

    bytes_params = sum(int(w.size) * w.dtype.itemsize for w in weights)
    cost = pl.CostEstimate(
        flops=2 * b_pad * (f_pad * h1 + h1 * h2 + h2 * h3 + h3 * t_pad),
        transcendentals=0,
        bytes_accessed=bytes_params
        + int(x_p.size) * x_p.dtype.itemsize
        + b_pad * t_pad * 4,
    )

    out = pl.pallas_call(
        functools.partial(_mlp_kernel, compute_dtype=compute_dtype),
        out_shape=jax.ShapeDtypeStruct((b_pad, t_pad), jnp.float32),
        grid=grid,
        in_specs=in_specs,
        out_specs=out_spec,
        compiler_params=pltpu.CompilerParams(
            dimension_semantics=("parallel",),   # batch tiles split across TCs (v7x)
        ),
        cost_estimate=cost,
    )(x_p, *weights)

    return out[:batch, :num_targets]


# ------------------------------------------------------------------------ init + reference
def init_params(key, num_feature, num_targets):
    """Deterministic parameter init mirroring the module's layer shapes.
    Weights are stored [in, out] (transposed vs. nn.Linear) so the kernel does x @ W."""
    dims = [(num_feature, 512), (512, 128), (128, 64), (64, num_targets)]
    names = ["1", "2", "3", "o"]
    params = {}
    keys = jax.random.split(key, 4 * len(dims))
    ki = 0
    for (din, dout), name in zip(dims, names):
        params[f"w{name}"] = (
            jax.random.normal(keys[ki], (din, dout), jnp.float32) * (1.0 / jnp.sqrt(din))
        )
        params[f"b{name}"] = jax.random.normal(keys[ki + 1], (1, dout), jnp.float32) * 0.01
        ki += 2
        if name != "o":  # batchnorm params for hidden layers only
            params[f"g{name}"] = 1.0 + 0.1 * jax.random.normal(keys[ki], (1, dout), jnp.float32)
            params[f"be{name}"] = 0.1 * jax.random.normal(keys[ki + 1], (1, dout), jnp.float32)
            params[f"m{name}"] = 0.05 * jax.random.normal(
                jax.random.fold_in(keys[ki], 7), (1, dout), jnp.float32
            )
            params[f"v{name}"] = 1.0 + 0.1 * jax.nn.softplus(
                jax.random.normal(jax.random.fold_in(keys[ki + 1], 11), (1, dout), jnp.float32)
            )
            ki += 2
    return params


def reference_forward(x, params):
    """Pure-JAX f32 reference with the module's exact (un-folded) semantics."""
    def bn(h, g, be, m, v):
        return (h - m) * jax.lax.rsqrt(v + EPS) * g + be

    h = x @ params["w1"] + params["b1"]
    h = jnp.maximum(bn(h, params["g1"], params["be1"], params["m1"], params["v1"]), 0.0)
    h = h @ params["w2"] + params["b2"]
    h = jnp.maximum(bn(h, params["g2"], params["be2"], params["m2"], params["v2"]), 0.0)
    h = h @ params["w3"] + params["b3"]
    h = jnp.maximum(bn(h, params["g3"], params["be3"], params["m3"], params["v3"]), 0.0)
    return h @ params["wo"] + params["bo"]


# ------------------------------------------------------------------------------- main
if __name__ == "__main__":
    num_feature = 32
    num_targets = 4

    key = jax.random.PRNGKey(0)
    k_x, k_p, k_x2 = jax.random.split(key, 3)
    params = init_params(k_p, num_feature, num_targets)

    # ---- case 1: tiny batch, f32 end-to-end (strict semantic check) ----------------
    batch = 8
    x = jax.random.normal(k_x, (batch, num_feature), jnp.float32)
    fp_f32 = fold_and_pad_params(params, num_feature, num_targets, compute_dtype=jnp.float32)
    out = jax.block_until_ready(
        reg_neural_net_forward(x, fp_f32, num_targets=num_targets,
                               compute_dtype=jnp.float32)
    )
    ref = reference_forward(x, params)
    assert out.shape == (batch, num_targets)
    assert jnp.allclose(out, ref, atol=1e-3, rtol=1e-3), "f32 Pallas output mismatch"

    # ---- case 2: ragged larger batch, multi-tile grid, bf16 matmul operands --------
    batch2 = 300  # not a multiple of the tile -> exercises batch padding + grid
    x2 = jax.random.normal(k_x2, (batch2, num_feature), jnp.float32)
    fp_bf16 = fold_and_pad_params(params, num_feature, num_targets,
                                  compute_dtype=jnp.bfloat16)
    out2 = jax.block_until_ready(
        reg_neural_net_forward(x2, fp_bf16, num_targets=num_targets,
                               compute_dtype=jnp.bfloat16, batch_tile=128)
    )
    ref2 = reference_forward(x2, params)
    assert out2.shape == (batch2, num_targets)
    assert jnp.allclose(out2, ref2, atol=1e-1, rtol=1e-1), "bf16 Pallas output mismatch"

    print("KERNEL_OK")
</pallas_src>

<mosaic_0001>
module attributes {stable_mosaic.version = 11 : i64} {
  func.func @_mlp_kernel(%arg0: i32, %arg1: memref<8x128xf32, #tpu.memory_space<vmem>>, %arg2: memref<128x512xf32, #tpu.memory_space<vmem>>, %arg3: memref<1x512xf32, #tpu.memory_space<vmem>>, %arg4: memref<512x128xf32, #tpu.memory_space<vmem>>, %arg5: memref<1x128xf32, #tpu.memory_space<vmem>>, %arg6: memref<128x64xf32, #tpu.memory_space<vmem>>, %arg7: memref<1x64xf32, #tpu.memory_space<vmem>>, %arg8: memref<64x128xf32, #tpu.memory_space<vmem>>, %arg9: memref<1x128xf32, #tpu.memory_space<vmem>>, %arg10: memref<8x128xf32, #tpu.memory_space<vmem>>) attributes {dimension_semantics = [#tpu.dimension_semantics<parallel>], iteration_bounds = array<i64: 1>, scalar_prefetch = 0 : i64, scratch_operands = 0 : i64, tpu.core_type = #tpu.core_type<tc>, window_params = [{transform_indices = @transform_0, window_bounds = array<i64: 8, 128>}, {pipeline_mode = #tpu.pipeline_mode<synchronous>, transform_indices = @transform_1, window_bounds = array<i64: 128, 512>}, {pipeline_mode = #tpu.pipeline_mode<synchronous>, transform_indices = @transform_2, window_bounds = array<i64: 1, 512>}, {pipeline_mode = #tpu.pipeline_mode<synchronous>, transform_indices = @transform_3, window_bounds = array<i64: 512, 128>}, {pipeline_mode = #tpu.pipeline_mode<synchronous>, transform_indices = @transform_4, window_bounds = array<i64: 1, 128>}, {pipeline_mode = #tpu.pipeline_mode<synchronous>, transform_indices = @transform_5, window_bounds = array<i64: 128, 64>}, {pipeline_mode = #tpu.pipeline_mode<synchronous>, transform_indices = @transform_6, window_bounds = array<i64: 1, 64>}, {pipeline_mode = #tpu.pipeline_mode<synchronous>, transform_indices = @transform_7, window_bounds = array<i64: 64, 128>}, {pipeline_mode = #tpu.pipeline_mode<synchronous>, transform_indices = @transform_8, window_bounds = array<i64: 1, 128>}, {transform_indices = @transform_9, window_bounds = array<i64: 8, 128>}]} {
    %c0 = arith.constant 0 : index
    %c0_0 = arith.constant 0 : index
    %0 = vector.load %arg1[%c0, %c0_0] : memref<8x128xf32, #tpu.memory_space<vmem>>, vector<8x128xf32>
    %c0_1 = arith.constant 0 : index
    %c0_2 = arith.constant 0 : index
    %1 = vector.load %arg2[%c0_1, %c0_2] : memref<128x512xf32, #tpu.memory_space<vmem>>, vector<128x512xf32>
    %cst = arith.constant dense<0.000000e+00> : vector<8x512xf32>
    %2 = tpu.matmul %0, %1, %cst {dimension_numbers = #tpu.dot_dimension_numbers<[1], [0], [0], [1], [0, 0, 1, 1], [], []>} : vector<8x128xf32>, vector<128x512xf32>, vector<8x512xf32> -> vector<8x512xf32>
    %c0_3 = arith.constant 0 : index
    %c0_4 = arith.constant 0 : index
    %3 = vector.load %arg3[%c0_3, %c0_4] : memref<1x512xf32, #tpu.memory_space<vmem>>, vector<1x512xf32>
    %4 = vector.broadcast %3 : vector<1x512xf32> to vector<8x512xf32>
    %5 = arith.addf %2, %4 : vector<8x512xf32>
    %cst_5 = arith.constant 0.000000e+00 : f32
    %6 = vector.broadcast %cst_5 : f32 to vector<8x512xf32>
    %7 = arith.maximumf %5, %6 : vector<8x512xf32>
    %c0_6 = arith.constant 0 : index
    %c0_7 = arith.constant 0 : index
    %8 = vector.load %arg4[%c0_6, %c0_7] : memref<512x128xf32, #tpu.memory_space<vmem>>, vector<512x128xf32>
    %cst_8 = arith.constant dense<0.000000e+00> : vector<8x128xf32>
    %9 = tpu.matmul %7, %8, %cst_8 {dimension_numbers = #tpu.dot_dimension_numbers<[1], [0], [0], [1], [0, 0, 1, 1], [], []>} : vector<8x512xf32>, vector<512x128xf32>, vector<8x128xf32> -> vector<8x128xf32>
    %c0_9 = arith.constant 0 : index
    %c0_10 = arith.constant 0 : index
    %10 = vector.load %arg5[%c0_9, %c0_10] : memref<1x128xf32, #tpu.memory_space<vmem>>, vector<1x128xf32>
    %11 = vector.broadcast %10 : vector<1x128xf32> to vector<8x128xf32>
    %12 = arith.addf %9, %11 : vector<8x128xf32>
    %cst_11 = arith.constant 0.000000e+00 : f32
    %13 = vector.broadcast %cst_11 : f32 to vector<8x128xf32>
    %14 = arith.maximumf %12, %13 : vector<8x128xf32>
    %c0_12 = arith.constant 0 : index
    %c0_13 = arith.constant 0 : index
    %15 = vector.load %arg6[%c0_12, %c0_13] : memref<128x64xf32, #tpu.memory_space<vmem>>, vector<128x64xf32>
    %cst_14 = arith.constant dense<0.000000e+00> : vector<8x64xf32>
    %16 = tpu.matmul %14, %15, %cst_14 {dimension_numbers = #tpu.dot_dimension_numbers<[1], [0], [0], [1], [0, 0, 1, 1], [], []>} : vector<8x128xf32>, vector<128x64xf32>, vector<8x64xf32> -> vector<8x64xf32>
    %c0_15 = arith.constant 0 : index
    %c0_16 = arith.constant 0 : index
    %17 = vector.load %arg7[%c0_15, %c0_16] : memref<1x64xf32, #tpu.memory_space<vmem>>, vector<1x64xf32>
    %18 = vector.broadcast %17 : vector<1x64xf32> to vector<8x64xf32>
    %19 = arith.addf %16, %18 : vector<8x64xf32>
    %cst_17 = arith.constant 0.000000e+00 : f32
    %20 = vector.broadcast %cst_17 : f32 to vector<8x64xf32>
    %21 = arith.maximumf %19, %20 : vector<8x64xf32>
    %c0_18 = arith.constant 0 : index
    %c0_19 = arith.constant 0 : index
    %22 = vector.load %arg8[%c0_18, %c0_19] : memref<64x128xf32, #tpu.memory_space<vmem>>, vector<64x128xf32>
    %cst_20 = arith.constant dense<0.000000e+00> : vector<8x128xf32>
    %23 = tpu.matmul %21, %22, %cst_20 {dimension_numbers = #tpu.dot_dimension_numbers<[1], [0], [0], [1], [0, 0, 1, 1], [], []>} : vector<8x64xf32>, vector<64x128xf32>, vector<8x128xf32> -> vector<8x128xf32>
    %c0_21 = arith.constant 0 : index
    %c0_22 = arith.constant 0 : index
    %24 = vector.load %arg9[%c0_21, %c0_22] : memref<1x128xf32, #tpu.memory_space<vmem>>, vector<1x128xf32>
    %25 = vector.broadcast %24 : vector<1x128xf32> to vector<8x128xf32>
    %26 = arith.addf %23, %25 : vector<8x128xf32>
    %c0_23 = arith.constant 0 : index
    %c0_24 = arith.constant 0 : index
    %27 = vector.load %arg10[%c0_23, %c0_24] : memref<8x128xf32, #tpu.memory_space<vmem>>, vector<8x128xf32>
    tpu.vector_store %arg10[%c0_23, %c0_24], %26 {strides = array<i32>} : memref<8x128xf32, #tpu.memory_space<vmem>>, vector<8x128xf32>,
    return
  }
  func.func @transform_0(%arg0: i32) -> (i32, i32) {
    %c0_i32 = arith.constant 0 : i32
    %c0_i32_0 = arith.constant 0 : i32
    return %arg0, %c0_i32 : i32, i32
  }
  func.func @transform_1(%arg0: i32) -> (i32, i32) {
    %c0_i32 = arith.constant 0 : i32
    %c0_i32_0 = arith.constant 0 : i32
    %c0_i32_1 = arith.constant 0 : i32
    return %c0_i32, %c0_i32_0 : i32, i32
  }
  func.func @transform_2(%arg0: i32) -> (i32, i32) {
    %c0_i32 = arith.constant 0 : i32
    %c0_i32_0 = arith.constant 0 : i32
    %c0_i32_1 = arith.constant 0 : i32
    return %c0_i32, %c0_i32_0 : i32, i32
  }
  func.func @transform_3(%arg0: i32) -> (i32, i32) {
    %c0_i32 = arith.constant 0 : i32
    %c0_i32_0 = arith.constant 0 : i32
    %c0_i32_1 = arith.constant 0 : i32
    return %c0_i32, %c0_i32_0 : i32, i32
  }
  func.func @transform_4(%arg0: i32) -> (i32, i32) {
    %c0_i32 = arith.constant 0 : i32
    %c0_i32_0 = arith.constant 0 : i32
    %c0_i32_1 = arith.constant 0 : i32
    return %c0_i32, %c0_i32_0 : i32, i32
  }
  func.func @transform_5(%arg0: i32) -> (i32, i32) {
    %c0_i32 = arith.constant 0 : i32
    %c0_i32_0 = arith.constant 0 : i32
    %c0_i32_1 = arith.constant 0 : i32
    return %c0_i32, %c0_i32_0 : i32, i32
  }
  func.func @transform_6(%arg0: i32) -> (i32, i32) {
    %c0_i32 = arith.constant 0 : i32
    %c0_i32_0 = arith.constant 0 : i32
    %c0_i32_1 = arith.constant 0 : i32
    return %c0_i32, %c0_i32_0 : i32, i32
  }
  func.func @transform_7(%arg0: i32) -> (i32, i32) {
    %c0_i32 = arith.constant 0 : i32
    %c0_i32_0 = arith.constant 0 : i32
    %c0_i32_1 = arith.constant 0 : i32
    return %c0_i32, %c0_i32_0 : i32, i32
  }
  func.func @transform_8(%arg0: i32) -> (i32, i32) {
    %c0_i32 = arith.constant 0 : i32
    %c0_i32_0 = arith.constant 0 : i32
    %c0_i32_1 = arith.constant 0 : i32
    return %c0_i32, %c0_i32_0 : i32, i32
  }
  func.func @transform_9(%arg0: i32) -> (i32, i32) {
    %c0_i32 = arith.constant 0 : i32
    %c0_i32_0 = arith.constant 0 : i32
    return %arg0, %c0_i32 : i32, i32
  }
}

</mosaic_0001>

<bundles_post_ra>
// kernel: reg_neural_net_forward.1
= control target key start
LH: loop header
LB: loop body
LE: loop exit
PB: predicated region body
PF: predicated region fallthrough
CT: control target
= control target key end

     0   :  { %14 = vsyncpa [#allocation3], 0  ;;  %s1083_s0 = inlined_call_operand.vmem [shape: f32[8,128], index: 0, kind: input, shape index: {}]   ;;  %s1084_s1 = inlined_call_operand.hbm [shape: f32[128,512], index: 1, kind: input, shape index: {}]   ;;  %s1085_s2 = inlined_call_operand.vmem [shape: f32[1,512], index: 2, kind: input, shape index: {}]   ;;  %s1086_s3 = inlined_call_operand.hbm [shape: f32[512,128], index: 3, kind: input, shape index: {}]   ;;  %s1087_s4 = inlined_call_operand.vmem [shape: f32[1,128], index: 4, kind: input, shape index: {}]   ;;  %s1088_s5 = inlined_call_operand.vmem [shape: f32[128,64], index: 5, kind: input, shape index: {}]   ;;  %s1089_s6 = inlined_call_operand.vmem [shape: f32[1,64], index: 6, kind: input, shape index: {}]   ;;  %s1090_s7 = inlined_call_operand.vmem [shape: f32[64,128], index: 7, kind: input, shape index: {}]   ;;  %s1091_s8 = inlined_call_operand.vmem [shape: f32[1,128], index: 8, kind: input, shape index: {}]   ;;  %s1092_s9 = inlined_call_operand.vmem [shape: f32[8,128], index: 9, kind: output, shape index: {}]  }
   0x1   :  { %15 = vsyncpa [#allocation5], 0  ;;  %s901_s30 = smov [#allocation2]  }
   0x2   :  { %s23_s10 = sshll.u32 %s901_s30, 4  ;;  %s24_s10 = int_to_ptr.vmem [resolvable:$true] %s23_s10 }
   0x3   :  { %s865_s11 = scalar_lea.vmem %s24_s10, 8192  ;;  %p870_p1 = scmp.lt.s32.totalorder %s24_s10, %s24_s10 }
   0x4   :  { %p866_p0 = scmp.ne.s32.totalorder %s24_s10, %s865_s11  ;;  %p871_p2 = scmp.lt.s32.totalorder %s865_s11, %s865_s11 }
   0x6   :  { %p872_p3 = por %p871_p2, %p870_p1 }
   0x8   :  { %p873_p4 = pnand %p872_p3, %p866_p0 }
   0xa   :  { %876 = shalt.err (!%p873_p4)
}
   0xb   :  { %s902_s12 = smov 512   ;;  %s903_s13 = smov 32  }
   0xc   :  { %29 = dma.hbm_to_vmem [thread:$0]  %s1084_s1, 8192, %s24_s10, [#allocation3], %s902_s12, %s902_s12, %s903_s13  }
   0xd   :  { %s904_s16 = smov [#allocation4]  }
   0xe   :  { %s37_s17 = sshll.u32 %s904_s16, 4  ;;  %s38_s17 = int_to_ptr.vmem [resolvable:$true] %s37_s17 }
   0xf   :  { %s885_s18 = scalar_lea.vmem %s38_s17, 8192  ;;  %p890_p6 = scmp.lt.s32.totalorder %s38_s17, %s38_s17 }
  0x10   :  { %p886_p5 = scmp.ne.s32.totalorder %s38_s17, %s885_s18  ;;  %p891_p7 = scmp.lt.s32.totalorder %s885_s18, %s885_s18 }
  0x12   :  { %p892_p8 = por %p891_p7, %p890_p6 }
  0x14   :  { %p893_p9 = pnand %p892_p8, %p886_p5 }
  0x16   :  { %896 = shalt.err (!%p893_p9)
}
  0x17   :  { %s905_s19 = smov 128   ;;  %s906_s20 = smov 8  }
  0x18   :  { %43 = dma.hbm_to_vmem [thread:$0]  %s1086_s3, 8192, %s38_s17, [#allocation5], %s905_s19, %s905_s19, %s906_s20  }
  0x19   :  { %897 = dma.done.wait [#allocation3], 8192  }
  0x1a   :  { %898 = vsyncadd [#allocation3], 4294959104 }
  0x1b   :  { %899 = dma.done.wait [#allocation5], 8192  }
  0x1c   :  { %900 = vsyncadd [#allocation5], 4294959104  ;;  %v907_v0 = vmov 0.0   ;;  %v122_v1 = vld [vmem:[#allocation2 + $0x1e8] sm:$0xff]  ;;  %v124_v2 = vld [vmem:[#allocation2 + $0x1f8] sm:$0xff]  ;;  %vm908_vm0 = vmmov 0  }
  0x1d   :  { %211 = vmatprep.mubr.f32.mxu0 %v907_v0  ;;  %282 = vmatprep.mubr.f32.mxu1 %v907_v0  ;;  %v121_v3 = vld [vmem:[#allocation2 + $0x1e0] sm:$0xff]  ;;  %v123_v4 = vld [vmem:[#allocation2 + $0x1f0] sm:$0xff]  ;;  %v118_v5 = vld [vmem:[#allocation2 + $0x1c8] sm:$0xff]  ;;  %vm614_vm1 = vcmask 523264  }
  0x1e   :  { %147 = vmatprep.subr.mxu0 %v122_v1  ;;  %218 = vmatprep.subr.mxu1 %v124_v2  ;;  %v120_v6 = vld [vmem:[#allocation2 + $0x1d8] sm:$0xff]  ;;  %v117_v7 = vld [vmem:[#allocation2 + $0x1c0] sm:$0xff]  ;;  %v119_v8 = vld [vmem:[#allocation2 + $0x1d0] sm:$0xff] }
  0x1f   :  { %148 = vmatpush1.msra.mxu0 %v121_v3  ;;  %219 = vmatpush1.msra.mxu1 %v123_v4  ;;  %v114_v9 = vld [vmem:[#allocation2 + $0x1a8] sm:$0xff]  ;;  %v116_v10 = vld [vmem:[#allocation2 + $0x1b8] sm:$0xff]  ;;  %v113_v11 = vld [vmem:[#allocation2 + $0x1a0] sm:$0xff] }
  0x20   :  { %149 = vmatprep.subr.mxu0 %v118_v5  ;;  %220 = vmatprep.subr.mxu1 %v120_v6  ;;  %v115_v12 = vld [vmem:[#allocation2 + $0x1b0] sm:$0xff]  ;;  %v110_v13 = vld [vmem:[#allocation2 + $0x188] sm:$0xff]  ;;  %v112_v14 = vld [vmem:[#allocation2 + $0x198] sm:$0xff] }
  0x21   :  { %150 = vmatpush1.msra.mxu0 %v117_v7  ;;  %221 = vmatpush1.msra.mxu1 %v119_v8  ;;  %v109_v15 = vld [vmem:[#allocation2 + $0x180] sm:$0xff]  ;;  %v111_v16 = vld [vmem:[#allocation2 + $0x190] sm:$0xff]  ;;  %v106_v17 = vld [vmem:[#allocation2 + $0x168] sm:$0xff] }
  0x22   :  { %151 = vmatprep.subr.mxu0 %v114_v9  ;;  %222 = vmatprep.subr.mxu1 %v116_v10  ;;  %v108_v18 = vld [vmem:[#allocation2 + $0x178] sm:$0xff]  ;;  %v105_v19 = vld [vmem:[#allocation2 + $0x160] sm:$0xff]  ;;  %v107_v20 = vld [vmem:[#allocation2 + $0x170] sm:$0xff] }
  0x23   :  { %152 = vmatpush1.msra.mxu0 %v113_v11  ;;  %223 = vmatpush1.msra.mxu1 %v115_v12  ;;  %v102_v21 = vld [vmem:[#allocation2 + $0x148] sm:$0xff]  ;;  %v104_v22 = vld [vmem:[#allocation2 + $0x158] sm:$0xff]  ;;  %v101_v23 = vld [vmem:[#allocation2 + $0x140] sm:$0xff] }
  0x24   :  { %153 = vmatprep.subr.mxu0 %v110_v13  ;;  %224 = vmatprep.subr.mxu1 %v112_v14  ;;  %v103_v24 = vld [vmem:[#allocation2 + $0x150] sm:$0xff]  ;;  %v98_v25 = vld [vmem:[#allocation2 + $0x128] sm:$0xff]  ;;  %v100_v26 = vld [vmem:[#allocation2 + $0x138] sm:$0xff] }
  0x25   :  { %154 = vmatpush1.msra.mxu0 %v109_v15  ;;  %225 = vmatpush1.msra.mxu1 %v111_v16  ;;  %v97_v27 = vld [vmem:[#allocation2 + $0x120] sm:$0xff]  ;;  %v99_v28 = vld [vmem:[#allocation2 + $0x130] sm:$0xff]  ;;  %v94_v29 = vld [vmem:[#allocation2 + $0x108] sm:$0xff] }
  0x26   :  { %155 = vmatprep.subr.mxu0 %v106_v17  ;;  %226 = vmatprep.subr.mxu1 %v108_v18  ;;  %v96_v30 = vld [vmem:[#allocation2 + $0x118] sm:$0xff]  ;;  %v93_v31 = vld [vmem:[#allocation2 + $0x100] sm:$0xff]  ;;  %v95_v32 = vld [vmem:[#allocation2 + $0x110] sm:$0xff] }
  0x27   :  { %156 = vmatpush1.msra.mxu0 %v105_v19  ;;  %227 = vmatpush1.msra.mxu1 %v107_v20  ;;  %v90_v33 = vld [vmem:[#allocation2 + $0xe8] sm:$0xff]  ;;  %v92_v34 = vld [vmem:[#allocation2 + $0xf8] sm:$0xff]  ;;  %v89_v35 = vld [vmem:[#allocation2 + $0xe0] sm:$0xff] }
  0x28   :  { %157 = vmatprep.subr.mxu0 %v102_v21  ;;  %228 = vmatprep.subr.mxu1 %v104_v22  ;;  %v91_v36 = vld [vmem:[#allocation2 + $0xf0] sm:$0xff]  ;;  %v86_v37 = vld [vmem:[#allocation2 + $0xc8] sm:$0xff]  ;;  %v88_v38 = vld [vmem:[#allocation2 + $0xd8] sm:$0xff] }
  0x29   :  { %158 = vmatpush1.msra.mxu0 %v101_v23  ;;  %229 = vmatpush1.msra.mxu1 %v103_v24  ;;  %v85_v39 = vld [vmem:[#allocation2 + $0xc0] sm:$0xff]  ;;  %v87_v40 = vld [vmem:[#allocation2 + $0xd0] sm:$0xff]  ;;  %v82_v41 = vld [vmem:[#allocation2 + $0xa8] sm:$0xff] }
  0x2a   :  { %159 = vmatprep.subr.mxu0 %v98_v25  ;;  %230 = vmatprep.subr.mxu1 %v100_v26  ;;  %v84_v42 = vld [vmem:[#allocation2 + $0xb8] sm:$0xff]  ;;  %v81_v43 = vld [vmem:[#allocation2 + $0xa0] sm:$0xff]  ;;  %v83_v44 = vld [vmem:[#allocation2 + $0xb0] sm:$0xff] }
  0x2b   :  { %160 = vmatpush1.msra.mxu0 %v97_v27  ;;  %231 = vmatpush1.msra.mxu1 %v99_v28  ;;  %v78_v45 = vld [vmem:[#allocation2 + $0x88] sm:$0xff]  ;;  %v80_v46 = vld [vmem:[#allocation2 + $0x98] sm:$0xff]  ;;  %v77_v47 = vld [vmem:[#allocation2 + $0x80] sm:$0xff] }
  0x2c   :  { %161 = vmatprep.subr.mxu0 %v94_v29  ;;  %232 = vmatprep.subr.mxu1 %v96_v30  ;;  %v79_v48 = vld [vmem:[#allocation2 + $0x90] sm:$0xff]  ;;  %v74_v49 = vld [vmem:[#allocation2 + $0x68] sm:$0xff]  ;;  %v76_v50 = vld [vmem:[#allocation2 + $0x78] sm:$0xff] }
  0x2d   :  { %162 = vmatpush1.msra.mxu0 %v93_v31  ;;  %233 = vmatpush1.msra.mxu1 %v95_v32  ;;  %v73_v51 = vld [vmem:[#allocation2 + $0x60] sm:$0xff]  ;;  %v75_v52 = vld [vmem:[#allocation2 + $0x70] sm:$0xff]  ;;  %v70_v53 = vld [vmem:[#allocation2 + $0x48] sm:$0xff] }
  0x2e   :  { %163 = vmatprep.subr.mxu0 %v90_v33  ;;  %234 = vmatprep.subr.mxu1 %v92_v34  ;;  %v72_v54 = vld [vmem:[#allocation2 + $0x58] sm:$0xff]  ;;  %v69_v55 = vld [vmem:[#allocation2 + $0x40] sm:$0xff]  ;;  %v71_v56 = vld [vmem:[#allocation2 + $0x50] sm:$0xff] }
  0x2f   :  { %164 = vmatpush1.msra.mxu0 %v89_v35  ;;  %235 = vmatpush1.msra.mxu1 %v91_v36  ;;  %v66_v57 = vld [vmem:[#allocation2 + $0x28] sm:$0xff]  ;;  %v68_v58 = vld [vmem:[#allocation2 + $0x38] sm:$0xff]  ;;  %v65_v59 = vld [vmem:[#allocation2 + $0x20] sm:$0xff] }
  0x30   :  { %165 = vmatprep.subr.mxu0 %v86_v37  ;;  %236 = vmatprep.subr.mxu1 %v88_v38  ;;  %v67_v60 = vld [vmem:[#allocation2 + $0x30] sm:$0xff]  ;;  %v62_v61 = vld [vmem:[#allocation2 + $0x8] sm:$0xff]  ;;  %v64_v62 = vld [vmem:[#allocation2 + $0x18] sm:$0xff] }
  0x31   :  { %166 = vmatpush1.msra.mxu0 %v85_v39  ;;  %237 = vmatpush1.msra.mxu1 %v87_v40  ;;  %v61_v63 = vld [vmem:[#allocation2] sm:$0xff]  ;;  %v63_v1 = vld [vmem:[#allocation2 + $0x10] sm:$0xff]  ;;  %v324_v3 = vld [vmem:[#allocation4 + $0xf8] sm:$0xff] }
  0x32   :  { %167 = vmatprep.subr.mxu0 %v82_v41  ;;  %238 = vmatprep.subr.mxu1 %v84_v42  ;;  %v60_v2 = vld [vmem:[%s1083_s0] sm:$0xff]  ;;  %v356_v4 = vld [vmem:[#allocation4 + $0x1f8] sm:$0xff]  ;;  %v323_v7 = vld [vmem:[#allocation4 + $0xf0] sm:$0xff] }
  0x33   :  { %168 = vmatpush1.msra.mxu0 %v81_v43  ;;  %239 = vmatpush1.msra.mxu1 %v83_v44  ;;  %v308_v5 = vld [vmem:[#allocation4 + $0x78] sm:$0xff]  ;;  %v355_v8 = vld [vmem:[#allocation4 + $0x1f0] sm:$0xff]  ;;  %v322_v11 = vld [vmem:[#allocation4 + $0xe8] sm:$0xff] }
  0x34   :  { %169 = vmatprep.subr.mxu0 %v78_v45  ;;  %240 = vmatprep.subr.mxu1 %v80_v46  ;;  %v340_v6 = vld [vmem:[#allocation4 + $0x178] sm:$0xff]  ;;  %v307_v9 = vld [vmem:[#allocation4 + $0x70] sm:$0xff]  ;;  %v354_v12 = vld [vmem:[#allocation4 + $0x1e8] sm:$0xff] }
  0x35   :  { %170 = vmatpush1.msra.mxu0 %v77_v47  ;;  %241 = vmatpush1.msra.mxu1 %v79_v48  ;;  %v339_v10 = vld [vmem:[#allocation4 + $0x170] sm:$0xff]  ;;  %v306_v13 = vld [vmem:[#allocation4 + $0x68] sm:$0xff]  ;;  %v321_v15 = vld [vmem:[#allocation4 + $0xe0] sm:$0xff] }
  0x36   :  { %171 = vmatprep.subr.mxu0 %v74_v49  ;;  %242 = vmatprep.subr.mxu1 %v76_v50  ;;  %v338_v14 = vld [vmem:[#allocation4 + $0x168] sm:$0xff]  ;;  %v353_v16 = vld [vmem:[#allocation4 + $0x1e0] sm:$0xff]  ;;  %v320_v19 = vld [vmem:[#allocation4 + $0xd8] sm:$0xff] }
  0x37   :  { %172 = vmatpush1.msra.mxu0 %v73_v51  ;;  %243 = vmatpush1.msra.mxu1 %v75_v52  ;;  %v305_v17 = vld [vmem:[#allocation4 + $0x60] sm:$0xff]  ;;  %v352_v20 = vld [vmem:[#allocation4 + $0x1d8] sm:$0xff]  ;;  %v319_v23 = vld [vmem:[#allocation4 + $0xd0] sm:$0xff] }
  0x38   :  { %173 = vmatprep.subr.mxu0 %v70_v53  ;;  %244 = vmatprep.subr.mxu1 %v72_v54  ;;  %v337_v18 = vld [vmem:[#allocation4 + $0x160] sm:$0xff]  ;;  %v304_v21 = vld [vmem:[#allocation4 + $0x58] sm:$0xff]  ;;  %v351_v24 = vld [vmem:[#allocation4 + $0x1d0] sm:$0xff] }
  0x39   :  { %174 = vmatpush1.msra.mxu0 %v69_v55  ;;  %245 = vmatpush1.msra.mxu1 %v71_v56  ;;  %v336_v22 = vld [vmem:[#allocation4 + $0x158] sm:$0xff]  ;;  %v303_v25 = vld [vmem:[#allocation4 + $0x50] sm:$0xff]  ;;  %v318_v27 = vld [vmem:[#allocation4 + $0xc8] sm:$0xff] }
  0x3a   :  { %175 = vmatprep.subr.mxu0 %v66_v57  ;;  %246 = vmatprep.subr.mxu1 %v68_v58  ;;  %v335_v26 = vld [vmem:[#allocation4 + $0x150] sm:$0xff]  ;;  %v350_v28 = vld [vmem:[#allocation4 + $0x1c8] sm:$0xff]  ;;  %v317_v31 = vld [vmem:[#allocation4 + $0xc0] sm:$0xff] }
  0x3b   :  { %176 = vmatpush1.msra.mxu0 %v65_v59  ;;  %247 = vmatpush1.msra.mxu1 %v67_v60  ;;  %v302_v29 = vld [vmem:[#allocation4 + $0x48] sm:$0xff]  ;;  %v349_v32 = vld [vmem:[#allocation4 + $0x1c0] sm:$0xff]  ;;  %v316_v35 = vld [vmem:[#allocation4 + $0xb8] sm:$0xff] }
  0x3c   :  { %177 = vmatprep.subr.mxu0 %v62_v61  ;;  %248 = vmatprep.subr.mxu1 %v64_v62  ;;  %v334_v30 = vld [vmem:[#allocation4 + $0x148] sm:$0xff]  ;;  %v301_v33 = vld [vmem:[#allocation4 + $0x40] sm:$0xff]  ;;  %v348_v36 = vld [vmem:[#allocation4 + $0x1b8] sm:$0xff] }
  0x3d   :  { %178 = vmatpush1.msra.mxu0 %v61_v63  ;;  %249 = vmatpush1.msra.mxu1 %v63_v1  ;;  %v333_v34 = vld [vmem:[#allocation4 + $0x140] sm:$0xff]  ;;  %v300_v37 = vld [vmem:[#allocation4 + $0x38] sm:$0xff]  ;;  %v315_v39 = vld [vmem:[#allocation4 + $0xb0] sm:$0xff] }
  0x3e   :  { %212 = vmatmul.mubr.f32.vlgmr.msra.gmra.mxu0 %v60_v2  ;;  %283 = vmatmul.mubr.f32.vlgmr.msra.gmra.mxu1 %v60_v2  ;;  %v332_v38 = vld [vmem:[#allocation4 + $0x138] sm:$0xff]  ;;  %v347_v40 = vld [vmem:[#allocation4 + $0x1b0] sm:$0xff]  ;;  %v314_v43 = vld [vmem:[#allocation4 + $0xa8] sm:$0xff] }
  0x3f   :  { %699 = vmatprep.subr.mxu0 %v324_v3  ;;  %734 = vmatprep.subr.mxu1 %v356_v4  ;;  %v299_v41 = vld [vmem:[#allocation4 + $0x30] sm:$0xff]  ;;  %v346_v44 = vld [vmem:[#allocation4 + $0x1a8] sm:$0xff]  ;;  %v313_v47 = vld [vmem:[#allocation4 + $0xa0] sm:$0xff]  ;;  %v127_v4 = vlaneseq }
  0x40   :  { %700 = vmatpush3.msra.mxu0 %v308_v5  ;;  %735 = vmatpush3.msra.mxu1 %v340_v6  ;;  %v331_v42 = vld [vmem:[#allocation4 + $0x130] sm:$0xff]  ;;  %v298_v45 = vld [vmem:[#allocation4 + $0x28] sm:$0xff]  ;;  %v345_v48 = vld [vmem:[#allocation4 + $0x1a0] sm:$0xff] }
  0x41   :  { %701 = vmatprep.subr.mxu0 %v323_v7  ;;  %736 = vmatprep.subr.mxu1 %v355_v8  ;;  %v330_v46 = vld [vmem:[#allocation4 + $0x128] sm:$0xff]  ;;  %v297_v49 = vld [vmem:[#allocation4 + $0x20] sm:$0xff]  ;;  %v312_v51 = vld [vmem:[#allocation4 + $0x98] sm:$0xff]  ;;  %v128_v5 = vshrl.u32 %v127_v4, 7 }
  0x42   :  { %702 = vmatpush3.msra.mxu0 %v307_v9  ;;  %737 = vmatpush3.msra.mxu1 %v339_v10  ;;  %v329_v50 = vld [vmem:[#allocation4 + $0x120] sm:$0xff]  ;;  %v344_v52 = vld [vmem:[#allocation4 + $0x198] sm:$0xff]  ;;  %v311_v55 = vld [vmem:[#allocation4 + $0x90] sm:$0xff] }
  0x43   :  { %703 = vmatprep.subr.mxu0 %v322_v11  ;;  %738 = vmatprep.subr.mxu1 %v354_v12  ;;  %v296_v53 = vld [vmem:[#allocation4 + $0x18] sm:$0xff]  ;;  %v343_v56 = vld [vmem:[#allocation4 + $0x190] sm:$0xff]  ;;  %v310_v59 = vld [vmem:[#allocation4 + $0x88] sm:$0xff]  ;;  %v137_v6 = vsub.s32 2, %v128_v5  ;;  %v129_v7 = vsub.s32 0, %v128_v5  ;;  %v133_v9 = vsub.s32 1, %v128_v5 }
  0x44   :  { %704 = vmatpush3.msra.mxu0 %v306_v13  ;;  %739 = vmatpush3.msra.mxu1 %v338_v14  ;;  %v328_v54 = vld [vmem:[#allocation4 + $0x118] sm:$0xff]  ;;  %v295_v57 = vld [vmem:[#allocation4 + $0x10] sm:$0xff]  ;;  %v342_v60 = vld [vmem:[#allocation4 + $0x188] sm:$0xff]  ;;  %v141_v10 = vsub.s32 3, %v128_v5 }
  0x45   :  { %705 = vmatprep.subr.mxu0 %v321_v15  ;;  %740 = vmatprep.subr.mxu1 %v353_v16  ;;  %v327_v58 = vld [vmem:[#allocation4 + $0x110] sm:$0xff]  ;;  %v294_v61 = vld [vmem:[#allocation4 + $0x8] sm:$0xff]  ;;  %v309_v63 = vld [vmem:[#allocation4 + $0x80] sm:$0xff] }
  0x46   :  { %706 = vmatpush3.msra.mxu0 %v305_v17  ;;  %741 = vmatpush3.msra.mxu1 %v337_v18  ;;  %v326_v62 = vld [vmem:[#allocation4 + $0x108] sm:$0xff]  ;;  %v341_v1 = vld [vmem:[#allocation4 + $0x180] sm:$0xff] }
  0x47   :  { %707 = vmatprep.subr.mxu0 %v320_v19  ;;  %742 = vmatprep.subr.mxu1 %v352_v20  ;;  %v293_v2 = vld [vmem:[#allocation4] sm:$0xff] }
  0x48   :  { %708 = vmatpush3.msra.mxu0 %v304_v21  ;;  %743 = vmatpush3.msra.mxu1 %v336_v22  ;;  %v325_v3 = vld [vmem:[#allocation4 + $0x100] sm:$0xff] }
  0x49   :  { %709 = vmatprep.subr.mxu0 %v319_v23  ;;  %744 = vmatprep.subr.mxu1 %v351_v24  ;;  %v125_v8 = vld [vmem:[%s1085_s2] sm:$0xf] }
  0x4a   :  { %710 = vmatpush3.msra.mxu0 %v303_v25  ;;  %745 = vmatpush3.msra.mxu1 %v335_v26  ;;  %v138_v11 = vrot.slane %v125_v8, %v137_v6  ;;  %v130_v12 = vrot.slane %v125_v8, %v129_v7  ;;  %v134_v13 = vrot.slane %v125_v8, %v133_v9 }
  0x4b   :  { %711 = vmatprep.subr.mxu0 %v318_v27  ;;  %746 = vmatprep.subr.mxu1 %v350_v28  ;;  %v142_v14 = vrot.slane %v125_v8, %v141_v10  ;;  %v520_v27 = vld [vmem:[%s1088_s5 + $0x78] sm:$0xff]  ;;  %v519_v28 = vld [vmem:[%s1088_s5 + $0x70] sm:$0xff] }
  0x4c   :  { %712 = vmatpush3.msra.mxu0 %v302_v29  ;;  %747 = vmatpush3.msra.mxu1 %v334_v30  ;;  %v518_v29 = vld [vmem:[%s1088_s5 + $0x68] sm:$0xff]  ;;  %v517_v30 = vld [vmem:[%s1088_s5 + $0x60] sm:$0xff] }
  0x4d   :  { %713 = vmatprep.subr.mxu0 %v317_v31  ;;  %748 = vmatprep.subr.mxu1 %v349_v32  ;;  %v516_v31 = vld [vmem:[%s1088_s5 + $0x58] sm:$0xff]  ;;  %v515_v32 = vld [vmem:[%s1088_s5 + $0x50] sm:$0xff] }
  0x4e   :  { %714 = vmatpush3.msra.mxu0 %v301_v33  ;;  %749 = vmatpush3.msra.mxu1 %v333_v34  ;;  %v514_v33 = vld [vmem:[%s1088_s5 + $0x48] sm:$0xff]  ;;  %v513_v34 = vld [vmem:[%s1088_s5 + $0x40] sm:$0xff] }
  0x4f   :  { %715 = vmatprep.subr.mxu0 %v316_v35  ;;  %750 = vmatprep.subr.mxu1 %v348_v36  ;;  %v512_v35 = vld [vmem:[%s1088_s5 + $0x38] sm:$0xff]  ;;  %v511_v36 = vld [vmem:[%s1088_s5 + $0x30] sm:$0xff] }
  0x50   :  { %716 = vmatpush3.msra.mxu0 %v300_v37  ;;  %751 = vmatpush3.msra.mxu1 %v332_v38  ;;  %v510_v37 = vld [vmem:[%s1088_s5 + $0x28] sm:$0xff]  ;;  %v509_v38 = vld [vmem:[%s1088_s5 + $0x20] sm:$0xff] }
  0x51   :  { %717 = vmatprep.subr.mxu0 %v315_v39  ;;  %752 = vmatprep.subr.mxu1 %v347_v40  ;;  %v508_v39 = vld [vmem:[%s1088_s5 + $0x18] sm:$0xff]  ;;  %v507_v40 = vld [vmem:[%s1088_s5 + $0x10] sm:$0xff] }
  0x52   :  { %718 = vmatpush3.msra.mxu0 %v299_v41  ;;  %753 = vmatpush3.msra.mxu1 %v331_v42  ;;  %v506_v41 = vld [vmem:[%s1088_s5 + $0x8] sm:$0xff]  ;;  %v505_v42 = vld [vmem:[%s1088_s5] sm:$0xff] }
  0x53   :  { %719 = vmatprep.subr.mxu0 %v314_v43  ;;  %754 = vmatprep.subr.mxu1 %v346_v44  ;;  %v606_v43 = vld [vmem:[%s1090_s7 + $0x38] sm:$0xff]  ;;  %v605_v44 = vld [vmem:[%s1090_s7 + $0x30] sm:$0xff] }
  0x54   :  { %720 = vmatpush3.msra.mxu0 %v298_v45  ;;  %755 = vmatpush3.msra.mxu1 %v330_v46  ;;  %v604_v45 = vld [vmem:[%s1090_s7 + $0x28] sm:$0xff]  ;;  %v603_v46 = vld [vmem:[%s1090_s7 + $0x20] sm:$0xff] }
  0x55   :  { %721 = vmatprep.subr.mxu0 %v313_v47  ;;  %756 = vmatprep.subr.mxu1 %v345_v48  ;;  %v602_v47 = vld [vmem:[%s1090_s7 + $0x18] sm:$0xff] }
  0x56   :  { %722 = vmatpush3.msra.mxu0 %v297_v49  ;;  %757 = vmatpush3.msra.mxu1 %v329_v50  ;;  %v695_v50 = vld [vmem:[%s1087_s4] ss:$0 sm:$0xff] }
  0x57   :  { %723 = vmatprep.subr.mxu0 %v312_v51  ;;  %758 = vmatprep.subr.mxu1 %v344_v52 }
  0x58   :  { %724 = vmatpush3.msra.mxu0 %v296_v53  ;;  %759 = vmatpush3.msra.mxu1 %v328_v54 }
  0x59   :  { %725 = vmatprep.subr.mxu0 %v311_v55  ;;  %760 = vmatprep.subr.mxu1 %v343_v56 }
  0x5a   :  { %726 = vmatpush3.msra.mxu0 %v295_v57  ;;  %761 = vmatpush3.msra.mxu1 %v327_v58  ;;  %v601_v58 = vld [vmem:[%s1090_s7 + $0x10] sm:$0xff] }
  0x5b   :  { %727 = vmatprep.subr.mxu0 %v310_v59  ;;  %762 = vmatprep.subr.mxu1 %v342_v60  ;;  %v600_v59 = vld [vmem:[%s1090_s7 + $0x8] sm:$0xff]  ;;  %v599_v60 = vld [vmem:[%s1090_s7] sm:$0xff] }
  0x5c   :  { %728 = vmatpush3.msra.mxu0 %v294_v61  ;;  %763 = vmatpush3.msra.mxu1 %v326_v62  ;;  %v696_v61 = vld [vmem:[%s1089_s6] ss:$0 sm:$0xff] }
  0x5d   :  { %729 = vmatprep.subr.mxu0 %v309_v63  ;;  %764 = vmatprep.subr.mxu1 %v341_v1 }
  0x5e   :  { %730 = vmatpush3.msra.mxu0 %v293_v2  ;;  %765 = vmatpush3.msra.mxu1 %v325_v3  ;;  %v697_v3 = vld [vmem:[%s1091_s8] ss:$0 sm:$0xff] }
  0x5f   :  { %795 = vmatprep.subr.mxu0 %v907_v0  ;;  %830 = vmatprep.subr.mxu1 %v907_v0 }
  0xfe   :  { %v213_v15 = vpop.f32.mrf.mxu0  ;;  %v284_v16 = vpop.f32.mrf.mxu1 }
  0xff   :  { %v285_v17 = vadd.f32 %v284_v16, %v138_v11  ;;  %v214_v18 = vadd.f32 %v213_v15, %v130_v12 }
 0x100   :  { %v215_v19 = vpop.f32.mrf.mxu0  ;;  %v286_v20 = vpop.f32.mrf.mxu1 }
 0x101   :  { %v216_v21 = vadd.f32 %v215_v19, %v134_v13  ;;  %v287_v22 = vadd.f32 %v286_v20, %v142_v14  ;;  %v291_v23 = vmax.f32 %v285_v17, 0.0  ;;  %v289_v26 = vmax.f32 %v214_v18, 0.0 }
 0x103   :  { %v290_v24 = vmax.f32 %v216_v21, 0.0  ;;  %v292_v25 = vmax.f32 %v287_v22, 0.0 }
 0x105   :  { %428 = vmatprep.mubr.f32.mxu0 %v290_v24  ;;  %498 = vmatprep.mubr.f32.mxu1 %v292_v25 }
 0x106   :  { %429 = vmatmul.mubr.f32.vlgmr.msra.gmra.mxu0 %v289_v26  ;;  %499 = vmatmul.mubr.f32.vlgmr.msra.gmra.mxu1 %v291_v23 }
 0x107   :  { %796 = vmatpush3.msra.mxu0 %v520_v27  ;;  %827 = vmatprep.mubr.msk.f32.mxu0 %vm908_vm0, %v907_v0 }
 0x108   :  { %797 = vmatprep.subr.mxu0 %v907_v0  ;;  %846 = vmatprep.mubr.msk.f32.mxu1 %vm908_vm0, %v907_v0 }
 0x109   :  { %798 = vmatpush3.msra.mxu0 %v519_v28  ;;  %831 = vmatpush3.msra.mxu1 %v606_v43 }
 0x10a   :  { %799 = vmatprep.subr.mxu0 %v907_v0  ;;  %832 = vmatprep.subr.mxu1 %v907_v0 }
 0x10b   :  { %800 = vmatpush3.msra.mxu0 %v518_v29  ;;  %833 = vmatpush3.msra.mxu1 %v605_v44 }
 0x10c   :  { %801 = vmatprep.subr.mxu0 %v907_v0  ;;  %834 = vmatprep.subr.mxu1 %v907_v0 }
 0x10d   :  { %802 = vmatpush3.msra.mxu0 %v517_v30  ;;  %835 = vmatpush3.msra.mxu1 %v604_v45 }
 0x10e   :  { %803 = vmatprep.subr.mxu0 %v907_v0  ;;  %836 = vmatprep.subr.mxu1 %v907_v0 }
 0x10f   :  { %804 = vmatpush3.msra.mxu0 %v516_v31  ;;  %837 = vmatpush3.msra.mxu1 %v603_v46 }
 0x110   :  { %805 = vmatprep.subr.mxu0 %v907_v0  ;;  %838 = vmatprep.subr.mxu1 %v907_v0 }
 0x111   :  { %806 = vmatpush3.msra.mxu0 %v515_v32  ;;  %839 = vmatpush3.msra.mxu1 %v602_v47 }
 0x112   :  { %807 = vmatprep.subr.mxu0 %v907_v0  ;;  %840 = vmatprep.subr.mxu1 %v907_v0 }
 0x113   :  { %808 = vmatpush3.msra.mxu0 %v514_v33  ;;  %841 = vmatpush3.msra.mxu1 %v601_v58 }
 0x114   :  { %809 = vmatprep.subr.mxu0 %v907_v0  ;;  %842 = vmatprep.subr.mxu1 %v907_v0 }
 0x115   :  { %810 = vmatpush3.msra.mxu0 %v513_v34  ;;  %843 = vmatpush3.msra.mxu1 %v600_v59 }
 0x116   :  { %811 = vmatprep.subr.mxu0 %v907_v0  ;;  %844 = vmatprep.subr.mxu1 %v907_v0 }
 0x117   :  { %812 = vmatpush3.msra.mxu0 %v512_v35  ;;  %845 = vmatpush3.msra.mxu1 %v599_v60 }
 0x118   :  { %813 = vmatprep.subr.mxu0 %v907_v0 }
 0x119   :  { %814 = vmatpush3.msra.mxu0 %v511_v36 }
 0x11a   :  { %815 = vmatprep.subr.mxu0 %v907_v0 }
 0x11b   :  { %816 = vmatpush3.msra.mxu0 %v510_v37 }
 0x11c   :  { %817 = vmatprep.subr.mxu0 %v907_v0 }
 0x11d   :  { %818 = vmatpush3.msra.mxu0 %v509_v38 }
 0x11e   :  { %819 = vmatprep.subr.mxu0 %v907_v0 }
 0x11f   :  { %820 = vmatpush3.msra.mxu0 %v508_v39 }
 0x120   :  { %821 = vmatprep.subr.mxu0 %v907_v0 }
 0x121   :  { %822 = vmatpush3.msra.mxu0 %v507_v40 }
 0x122   :  { %823 = vmatprep.subr.mxu0 %v907_v0 }
 0x123   :  { %824 = vmatpush3.msra.mxu0 %v506_v41 }
 0x124   :  { %825 = vmatprep.subr.mxu0 %v907_v0 }
 0x125   :  { %826 = vmatpush3.msra.mxu0 %v505_v42 }
 0x1c6   :  { %v731_v48 = vpop.f32.mrf.mxu0  ;;  %v766_v49 = vpop.f32.mrf.mxu1 }
 0x1c8   :  { %v732_v51 = vpop.f32.mrf.mxu0  ;;  %v767_v52 = vpop.f32.mrf.mxu1 }
 0x1c9   :  { %v733_v53 = vadd.f32 %v732_v51, %v731_v48  ;;  %v768_v55 = vadd.f32 %v767_v52, %v766_v49 }
 0x1cb   :  { %v431_v54 = vadd.f32 %v733_v53, %v695_v50 }
 0x1cd   :  { %v501_v56 = vadd.f32 %v768_v55, %v431_v54 }
 0x1cf   :  { %v504_v57 = vmax.f32 %v501_v56, 0.0 }
 0x1d1   :  { %828 = vmatmul.mubr.f32.vlgmr.msra.gmra.mxu0 %v504_v57 }
 0x291   :  { %v594_v62 = vpop.f32.mrf.mxu0 }
 0x292   :  { %v595_v63 = vadd.f32 %v696_v61, %v594_v62 }
 0x293   :  { %v829_v1 = vpop.f32.mrf.mxu0 }
 0x294   :  { %v598_v2 = vmax.f32 %v595_v63, 0.0 }
 0x296   :  { %847 = vmatmul.mubr.msk.f32.vlgmr.msra.gmra.mxu1 %vm614_vm1, %v598_v2 }
 0x356   :  { %v684_v0 = vpop.f32.mrf.mxu1 }
 0x357   :  { %v685_v4 = vadd.f32 %v697_v3, %v684_v0 }
 0x358   :  { %v848_v5 = vpop.f32.mrf.mxu1 }
 0x359   :  { %688 = vst [vmem:[%s1092_s9] sm:$0xff] %v685_v4 }
 0x35a   :  { %693 = vsyncpa [#allocation3], 1 }
 0x35b   :  { %694 = vsyncpa [#allocation5], 1 }

</bundles_post_ra>
